<compile_context>
chip_gen: v5e
topology: v5e:2x2
jax: 0.10.0
libtpu: 0.0.40
codegen_flags: <defaults>
</compile_context>

<pallas_src>
import math

import jax
import jax.numpy as jnp
from jax.experimental import pallas as pl
from jax.experimental.pallas import tpu as pltpu


def critic_kernel(x_ref, u_ref, w1x_ref, w1u_ref, b1_ref, w2_ref, b2_ref,
                  w3_ref, b3_ref, out_ref):
    """One batch tile of the critic MLP (weights resident across tiles)."""
    # fc1 (+ReLU) -- split-weight form of fc1(cat([x, u], 1)), bf16 MXU, f32 acc
    h1 = jnp.dot(x_ref[...].astype(jnp.bfloat16), w1x_ref[...],
                 preferred_element_type=jnp.float32)
    h1 += jnp.dot(u_ref[...].astype(jnp.bfloat16), w1u_ref[...],
                  preferred_element_type=jnp.float32)
    h1 = jnp.maximum(h1 + b1_ref[...], 0.0)

    # fc2 (+ReLU)
    h2 = jnp.dot(h1.astype(jnp.bfloat16), w2_ref[...],
                 preferred_element_type=jnp.float32)
    h2 = jnp.maximum(h2 + b2_ref[...], 0.0)

    # fc3: [tm,256] x [256,1] done as VPU multiply + lane reduce (keeps the
    # MXU free and avoids a 1-lane-wide matmul / masked store pattern).
    q = jnp.sum(h2 * w3_ref[...].astype(jnp.float32), axis=-1, keepdims=True)
    out_ref[...] = (q + b3_ref[0]).astype(out_ref.dtype)


def _round_up(x, m):
    return ((x + m - 1) // m) * m


def critic_forward(x, u, params, *, block_m=256):
    """x: [B, state_dim], u: [B, action_dim] -> q: [B, 1] (float32)."""
    w1x, w1u, b1, w2, b2, w3, b3 = params
    batch, state_dim = x.shape
    action_dim = u.shape[1]
    h1_dim = w1x.shape[1]   # 512
    h2_dim = w2.shape[1]    # 256

    # Batch tile: multiple of 8 (f32 sublane), capped so per-tile activations
    # stay tiny even under v7x's 64 MiB VMEM / 32 MiB scoped default.
    tm = min(block_m, _round_up(batch, 8))
    padded_b = _round_up(batch, tm)
    if padded_b != batch:
        pad = padded_b - batch
        x = jnp.pad(x, ((0, pad), (0, 0)))
        u = jnp.pad(u, ((0, pad), (0, 0)))

    # bf16 weights (biases kept f32 for the f32 epilogue math).
    bf16 = jnp.bfloat16
    w1x_b, w1u_b, w2_b, w3_b = (w.astype(bf16) for w in (w1x, w1u, w2, w3))

    grid = (padded_b // tm,)
    out = pl.pallas_call(
        critic_kernel,
        out_shape=jax.ShapeDtypeStruct((padded_b, 1), jnp.float32),
        grid=grid,
        in_specs=[
            pl.BlockSpec((tm, state_dim), lambda i: (i, 0)),        # x tile
            pl.BlockSpec((tm, action_dim), lambda i: (i, 0)),       # u tile
            pl.BlockSpec((state_dim, h1_dim), lambda i: (0, 0)),    # W1x (resident)
            pl.BlockSpec((action_dim, h1_dim), lambda i: (0, 0)),   # W1u (resident)
            pl.BlockSpec((1, h1_dim), lambda i: (0, 0)),            # b1
            pl.BlockSpec((h1_dim, h2_dim), lambda i: (0, 0)),       # W2 (resident)
            pl.BlockSpec((1, h2_dim), lambda i: (0, 0)),            # b2
            pl.BlockSpec((1, h2_dim), lambda i: (0, 0)),            # W3 as [1,256] row
            pl.BlockSpec(memory_space=pltpu.MemorySpace.SMEM),      # b3 scalar
        ],
        out_specs=pl.BlockSpec((tm, 1), lambda i: (i, 0)),
        compiler_params=pltpu.CompilerParams(
            dimension_semantics=("parallel",)),  # batch axis -> both TCs on v7x
    )(x, u, w1x_b, w1u_b, b1, w2_b, b2, w3_b, b3)

    return out[:batch]


def init_critic_params(key, state_dim, action_dim):
    """U[-1/sqrt(fan_in), +1/sqrt(fan_in)], mimicking torch.nn.Linear default."""
    def linear(k, fan_in, fan_out):
        kw, kb = jax.random.split(k)
        bound = 1.0 / math.sqrt(fan_in)
        w = jax.random.uniform(kw, (fan_in, fan_out), jnp.float32, -bound, bound)
        b = jax.random.uniform(kb, (fan_out,), jnp.float32, -bound, bound)
        return w, b

    k1, k2, k3 = jax.random.split(key, 3)
    w1, b1 = linear(k1, state_dim + action_dim, 512)
    w2, b2 = linear(k2, 512, 256)
    w3, b3 = linear(k3, 256, 1)
    # Split W1 along its input dim so the kernel never needs cat([x, u], 1);
    # store W3 as a [1, 256] row for the VPU dot; b3 stays a (1,) scalar.
    return (w1[:state_dim], w1[state_dim:], b1.reshape(1, -1),
            w2, b2.reshape(1, -1), w3.T, b3)


def critic_reference(x, u, params):
    """Pure-JAX f32 reference (mathematically identical to the torch module)."""
    w1x, w1u, b1, w2, b2, w3, b3 = params
    h = jnp.concatenate([x, u], axis=1)
    w1 = jnp.concatenate([w1x, w1u], axis=0)
    h = jax.nn.relu(h @ w1 + b1)
    h = jax.nn.relu(h @ w2 + b2)
    return h @ w3.T + b3


if __name__ == "__main__":
    state_dim, action_dim, batch = 16, 8, 2

    key = jax.random.PRNGKey(0)
    kx, ku, kp = jax.random.split(key, 3)
    x = jax.random.normal(kx, (batch, state_dim), jnp.float32)
    u = jax.random.normal(ku, (batch, action_dim), jnp.float32)
    params = init_critic_params(kp, state_dim, action_dim)

    q = critic_forward(x, u, params)
    jax.block_until_ready(q)

    q_ref = critic_reference(x, u, params)
    assert q.shape == (batch, 1), q.shape
    # bf16 weights with f32 accumulation vs. an all-f32 reference.
    assert jnp.allclose(q, q_ref, atol=5e-2, rtol=5e-2), (q, q_ref)

    print("KERNEL_OK")
</pallas_src>

<mosaic_0001>
module attributes {stable_mosaic.version = 11 : i64} {
  func.func @critic_kernel(%arg0: i32, %arg1: memref<8x16xf32, #tpu.memory_space<vmem>>, %arg2: memref<8x8xf32, #tpu.memory_space<vmem>>, %arg3: memref<16x512xbf16, #tpu.memory_space<vmem>>, %arg4: memref<8x512xbf16, #tpu.memory_space<vmem>>, %arg5: memref<1x512xf32, #tpu.memory_space<vmem>>, %arg6: memref<512x256xbf16, #tpu.memory_space<vmem>>, %arg7: memref<1x256xf32, #tpu.memory_space<vmem>>, %arg8: memref<1x256xbf16, #tpu.memory_space<vmem>>, %arg9: memref<1xf32, #tpu.memory_space<smem>>, %arg10: memref<8x1xf32, #tpu.memory_space<vmem>>) attributes {dimension_semantics = [#tpu.dimension_semantics<parallel>], iteration_bounds = array<i64: 1>, scalar_prefetch = 0 : i64, scratch_operands = 0 : i64, tpu.core_type = #tpu.core_type<tc>, window_params = [{transform_indices = @transform_0, window_bounds = array<i64: 8, 16>}, {transform_indices = @transform_1, window_bounds = array<i64: 8, 8>}, {pipeline_mode = #tpu.pipeline_mode<synchronous>, transform_indices = @transform_2, window_bounds = array<i64: 16, 512>}, {pipeline_mode = #tpu.pipeline_mode<synchronous>, transform_indices = @transform_3, window_bounds = array<i64: 8, 512>}, {pipeline_mode = #tpu.pipeline_mode<synchronous>, transform_indices = @transform_4, window_bounds = array<i64: 1, 512>}, {pipeline_mode = #tpu.pipeline_mode<synchronous>, transform_indices = @transform_5, window_bounds = array<i64: 512, 256>}, {pipeline_mode = #tpu.pipeline_mode<synchronous>, transform_indices = @transform_6, window_bounds = array<i64: 1, 256>}, {pipeline_mode = #tpu.pipeline_mode<synchronous>, transform_indices = @transform_7, window_bounds = array<i64: 1, 256>}, {transform_indices = @transform_8, window_bounds = array<i64: 1>}, {transform_indices = @transform_9, window_bounds = array<i64: 8, 1>}]} {
    %c0 = arith.constant 0 : index
    %c0_0 = arith.constant 0 : index
    %0 = vector.load %arg1[%c0, %c0_0] : memref<8x16xf32, #tpu.memory_space<vmem>>, vector<8x16xf32>
    %1 = arith.truncf %0 : vector<8x16xf32> to vector<8x16xbf16>
    %c0_1 = arith.constant 0 : index
    %c0_2 = arith.constant 0 : index
    %2 = vector.load %arg3[%c0_1, %c0_2] : memref<16x512xbf16, #tpu.memory_space<vmem>>, vector<16x512xbf16>
    %cst = arith.constant dense<0.000000e+00> : vector<8x512xf32>
    %3 = tpu.matmul %1, %2, %cst {dimension_numbers = #tpu.dot_dimension_numbers<[1], [0], [0], [1], [0, 0, 1, 1], [], []>} : vector<8x16xbf16>, vector<16x512xbf16>, vector<8x512xf32> -> vector<8x512xf32>
    %c0_3 = arith.constant 0 : index
    %c0_4 = arith.constant 0 : index
    %4 = vector.load %arg2[%c0_3, %c0_4] : memref<8x8xf32, #tpu.memory_space<vmem>>, vector<8x8xf32>
    %5 = arith.truncf %4 : vector<8x8xf32> to vector<8x8xbf16>
    %c0_5 = arith.constant 0 : index
    %c0_6 = arith.constant 0 : index
    %6 = vector.load %arg4[%c0_5, %c0_6] : memref<8x512xbf16, #tpu.memory_space<vmem>>, vector<8x512xbf16>
    %cst_7 = arith.constant dense<0.000000e+00> : vector<8x512xf32>
    %7 = tpu.matmul %5, %6, %cst_7 {dimension_numbers = #tpu.dot_dimension_numbers<[1], [0], [0], [1], [0, 0, 1, 1], [], []>} : vector<8x8xbf16>, vector<8x512xbf16>, vector<8x512xf32> -> vector<8x512xf32>
    %8 = arith.addf %3, %7 : vector<8x512xf32>
    %c0_8 = arith.constant 0 : index
    %c0_9 = arith.constant 0 : index
    %9 = vector.load %arg5[%c0_8, %c0_9] : memref<1x512xf32, #tpu.memory_space<vmem>>, vector<1x512xf32>
    %10 = vector.broadcast %9 : vector<1x512xf32> to vector<8x512xf32>
    %11 = arith.addf %8, %10 : vector<8x512xf32>
    %cst_10 = arith.constant 0.000000e+00 : f32
    %12 = vector.broadcast %cst_10 : f32 to vector<8x512xf32>
    %13 = arith.maximumf %11, %12 : vector<8x512xf32>
    %14 = arith.truncf %13 : vector<8x512xf32> to vector<8x512xbf16>
    %c0_11 = arith.constant 0 : index
    %c0_12 = arith.constant 0 : index
    %15 = vector.load %arg6[%c0_11, %c0_12] : memref<512x256xbf16, #tpu.memory_space<vmem>>, vector<512x256xbf16>
    %cst_13 = arith.constant dense<0.000000e+00> : vector<8x256xf32>
    %16 = tpu.matmul %14, %15, %cst_13 {dimension_numbers = #tpu.dot_dimension_numbers<[1], [0], [0], [1], [0, 0, 1, 1], [], []>} : vector<8x512xbf16>, vector<512x256xbf16>, vector<8x256xf32> -> vector<8x256xf32>
    %c0_14 = arith.constant 0 : index
    %c0_15 = arith.constant 0 : index
    %17 = vector.load %arg7[%c0_14, %c0_15] : memref<1x256xf32, #tpu.memory_space<vmem>>, vector<1x256xf32>
    %18 = vector.broadcast %17 : vector<1x256xf32> to vector<8x256xf32>
    %19 = arith.addf %16, %18 : vector<8x256xf32>
    %cst_16 = arith.constant 0.000000e+00 : f32
    %20 = vector.broadcast %cst_16 : f32 to vector<8x256xf32>
    %21 = arith.maximumf %19, %20 : vector<8x256xf32>
    %c0_17 = arith.constant 0 : index
    %c0_18 = arith.constant 0 : index
    %22 = vector.load %arg8[%c0_17, %c0_18] : memref<1x256xbf16, #tpu.memory_space<vmem>>, vector<1x256xbf16>
    %23 = arith.extf %22 : vector<1x256xbf16> to vector<1x256xf32>
    %24 = vector.broadcast %23 : vector<1x256xf32> to vector<8x256xf32>
    %25 = arith.mulf %21, %24 : vector<8x256xf32>
    %cst_19 = arith.constant dense<0.000000e+00> : vector<8xf32>
    %26 = vector.multi_reduction <add>, %25, %cst_19 [1] : vector<8x256xf32> to vector<8xf32>
    %27 = vector.shape_cast %26 : vector<8xf32> to vector<8x1xf32>
    %c0_20 = arith.constant 0 : index
    %28 = memref.load %arg9[%c0_20] : memref<1xf32, #tpu.memory_space<smem>>
    %29 = vector.broadcast %28 : f32 to vector<8x1xf32>
    %30 = arith.addf %27, %29 : vector<8x1xf32>
    %c0_21 = arith.constant 0 : index
    %c0_22 = arith.constant 0 : index
    %31 = vector.load %arg10[%c0_21, %c0_22] : memref<8x1xf32, #tpu.memory_space<vmem>>, vector<8x1xf32>
    tpu.vector_store %arg10[%c0_21, %c0_22], %30 {strides = array<i32>} : memref<8x1xf32, #tpu.memory_space<vmem>>, vector<8x1xf32>,
    return
  }
  func.func @transform_0(%arg0: i32) -> (i32, i32) {
    %c0_i32 = arith.constant 0 : i32
    %c0_i32_0 = arith.constant 0 : i32
    return %arg0, %c0_i32 : i32, i32
  }
  func.func @transform_1(%arg0: i32) -> (i32, i32) {
    %c0_i32 = arith.constant 0 : i32
    %c0_i32_0 = arith.constant 0 : i32
    return %arg0, %c0_i32 : i32, i32
  }
  func.func @transform_2(%arg0: i32) -> (i32, i32) {
    %c0_i32 = arith.constant 0 : i32
    %c0_i32_0 = arith.constant 0 : i32
    %c0_i32_1 = arith.constant 0 : i32
    return %c0_i32, %c0_i32_0 : i32, i32
  }
  func.func @transform_3(%arg0: i32) -> (i32, i32) {
    %c0_i32 = arith.constant 0 : i32
    %c0_i32_0 = arith.constant 0 : i32
    %c0_i32_1 = arith.constant 0 : i32
    return %c0_i32, %c0_i32_0 : i32, i32
  }
  func.func @transform_4(%arg0: i32) -> (i32, i32) {
    %c0_i32 = arith.constant 0 : i32
    %c0_i32_0 = arith.constant 0 : i32
    %c0_i32_1 = arith.constant 0 : i32
    return %c0_i32, %c0_i32_0 : i32, i32
  }
  func.func @transform_5(%arg0: i32) -> (i32, i32) {
    %c0_i32 = arith.constant 0 : i32
    %c0_i32_0 = arith.constant 0 : i32
    %c0_i32_1 = arith.constant 0 : i32
    return %c0_i32, %c0_i32_0 : i32, i32
  }
  func.func @transform_6(%arg0: i32) -> (i32, i32) {
    %c0_i32 = arith.constant 0 : i32
    %c0_i32_0 = arith.constant 0 : i32
    %c0_i32_1 = arith.constant 0 : i32
    return %c0_i32, %c0_i32_0 : i32, i32
  }
  func.func @transform_7(%arg0: i32) -> (i32, i32) {
    %c0_i32 = arith.constant 0 : i32
    %c0_i32_0 = arith.constant 0 : i32
    %c0_i32_1 = arith.constant 0 : i32
    return %c0_i32, %c0_i32_0 : i32, i32
  }
  func.func @transform_8(%arg0: i32) -> i32 {
    %c0_i32 = arith.constant 0 : i32
    %c0_i32_0 = arith.constant 0 : i32
    return %c0_i32 : i32
  }
  func.func @transform_9(%arg0: i32) -> (i32, i32) {
    %c0_i32 = arith.constant 0 : i32
    %c0_i32_0 = arith.constant 0 : i32
    return %arg0, %c0_i32 : i32, i32
  }
}

</mosaic_0001>

<bundles_post_ra>
// kernel: tpu_custom_call.1
= control target key start
LH: loop header
LB: loop body
LE: loop exit
PB: predicated region body
PF: predicated region fallthrough
CT: control target
= control target key end

     0   :  { %15 = vsyncpa [#allocation4], 0  ;;  %s1395_s0 = inlined_call_operand.hbm [shape: f32[8,16], index: 0, kind: input, shape index: {}]   ;;  %s1396_s1 = inlined_call_operand.hbm [shape: f32[8,8], index: 1, kind: input, shape index: {}]   ;;  %s1397_s2 = inlined_call_operand.hbm [shape: bf16[16,512], index: 2, kind: input, shape index: {}]   ;;  %s1398_s3 = inlined_call_operand.hbm [shape: bf16[8,512], index: 3, kind: input, shape index: {}]   ;;  %s1399_s4 = inlined_call_operand.vmem [shape: f32[1,512], index: 4, kind: input, shape index: {}]   ;;  %s1400_s5 = inlined_call_operand.hbm [shape: bf16[512,256], index: 5, kind: input, shape index: {}]   ;;  %s1401_s6 = inlined_call_operand.vmem [shape: f32[1,256], index: 6, kind: input, shape index: {}]   ;;  %s1402_s7 = inlined_call_operand.vmem [shape: bf16[1,256], index: 7, kind: input, shape index: {}]   ;;  %s1403_s8 = inlined_call_operand.<no memory space> [shape: f32[1], index: 8, kind: input, shape index: {}]   ;;  %s1404_s9 = inlined_call_operand.vmem [shape: f32[8,1], index: 9, kind: output, shape index: {}]  }
   0x1   :  { %16 = vsyncpa [#allocation6], 0  ;;  %s34_s11 = sshll.u32 %s1396_s1, 4  ;;  %s35_s11 = int_to_ptr.hbm [resolvable:$true] %s34_s11 }
   0x2   :  { %17 = vsyncpa [#allocation9], 0  ;;  %s1298_s12 = smov [#allocation5]   ;;  %s58_s16 = sshll.u32 %s1398_s3, 4  ;;  %s59_s16 = int_to_ptr.hbm [resolvable:$true] %s58_s16 }
   0x3   :  { %s36_s13 = sshll.u32 %s1298_s12, 4  ;;  %s1299_s17 = smov [#allocation8]   ;;  %s37_s13 = int_to_ptr.vmem [resolvable:$true] %s36_s13 }
   0x4   :  { %39 = dma.hbm_to_vmem [thread:$0]  %s35_s11, 128, %s37_s13, [#allocation6]  }
   0x5   :  { %s60_s18 = sshll.u32 %s1299_s17, 4  ;;  %s23_s21 = sshll.u32 %s1395_s0, 4  ;;  %s61_s18 = int_to_ptr.vmem [resolvable:$true] %s60_s18  ;;  %s24_s21 = int_to_ptr.hbm [resolvable:$true] %s23_s21 }
   0x6   :  { %63 = dma.hbm_to_vmem [thread:$0]  %s59_s16, 256, %s61_s18, [#allocation9]  }
   0x7   :  { %s44_s23 = sshll.u32 %s1397_s2, 4  ;;  %s1300_s24 = smov [#allocation3]   ;;  %s45_s23 = int_to_ptr.hbm [resolvable:$true] %s44_s23 }
   0x8   :  { %s25_s25 = sshll.u32 %s1300_s24, 4  ;;  %s1301_s3 = smov [#allocation7]   ;;  %s26_s25 = int_to_ptr.vmem [resolvable:$true] %s25_s25 }
   0x9   :  { %28 = dma.hbm_to_vmem [thread:$0]  %s24_s21, 128, %s26_s25, [#allocation4]  }
   0xa   :  { %s46_s26 = sshll.u32 %s1301_s3, 4  ;;  %s1302_s27 = smov 256   ;;  %s47_s26 = int_to_ptr.vmem [resolvable:$true] %s46_s26 }
   0xb   :  { %s1303_s28 = smov 16   ;;  %s70_s30 = sshll.u32 %s1400_s5, 4  ;;  %s71_s30 = int_to_ptr.hbm [resolvable:$true] %s70_s30 }
   0xc   :  { %52 = dma.hbm_to_vmem [thread:$0]  %s45_s23, 512, %s47_s26, [#allocation6], %s1302_s27, %s1302_s27, %s1303_s28  }
   0xd   :  { %s1304_s10 = smov [#allocation10]   ;;  %s1305_s2 = smov 128  }
   0xe   :  { %s72_s11 = sshll.u32 %s1304_s10, 4  ;;  %s1306_s12 = smov 8   ;;  %s73_s11 = int_to_ptr.vmem [resolvable:$true] %s72_s11 }
   0xf   :  { %78 = dma.hbm_to_vmem [thread:$0]  %s71_s30, 8192, %s73_s11, [#allocation9], %s1305_s2, %s1305_s2, %s1306_s12  }
  0x10   :  { %1292 = dma.done.wait [#allocation4], 128  }
  0x11   :  { %1293 = vsyncadd [#allocation4], 4294967168 }
  0x12   :  { %1294 = dma.done.wait [#allocation6], 640  }
  0x13   :  { %1295 = vsyncadd [#allocation6], 4294966656 }
  0x14   :  { %1296 = dma.done.wait [#allocation9], 8448  }
  0x15   :  { %1297 = vsyncadd [#allocation9], 4294958848  ;;  %v114_v0 = vld [vmem:[#allocation8] sm:$0xff]  ;;  %v115_v1 = vld [vmem:[#allocation8 + $0x8] sm:$0xff]  ;;  %vm130_vm0 = vcmask 1043456   ;;  %vm126_vm1 = vcmask 64512  }
  0x16   :  { %v112_v2 = vld [vmem:[#allocation5] sm:$0xff]  ;;  %v118_v3 = vunpack.c.l.b16 %v114_v0  ;;  %v119_v4 = vunpack.c.h.b16 %v114_v0  ;;  %v120_v5 = vunpack.c.l.b16 %v115_v1  ;;  %v121_v6 = vunpack.c.h.b16 %v115_v1  ;;  %v829_v7 = vld [vmem:[#allocation7 + $0x8] sm:$0xf]  ;;  %v1096_v9 = vld [vmem:[#allocation7 + $0xc] sm:$0xf] }
  0x17   :  { %v1098_v8 = vld [vmem:[#allocation7 + $0x14] sm:$0xf0]  ;;  %v831_v10 = vld [vmem:[#allocation7 + $0x18] sm:$0xf0]  ;;  %v821_v11 = vld [vmem:[#allocation7] sm:$0xf]  ;;  %v113_v19 = vpack.c.bf16 %v112_v2, %v112_v2 }
  0x18   :  { %v122_v12 = vpack.c.b16 %v118_v3, %v118_v3  ;;  %v123_v13 = vpack.c.b16 %v119_v4, %v119_v4  ;;  %v124_v14 = vpack.c.b16 %v120_v5, %v120_v5  ;;  %v125_v15 = vpack.c.b16 %v121_v6, %v121_v6  ;;  %v1097_v16 = vld [vmem:[#allocation7 + $0xc] sm:$0xf0]  ;;  %v1095_v17 = vld [vmem:[#allocation7 + $0x4] sm:$0xf]  ;;  %v823_v18 = vld [vmem:[#allocation7 + $0x10] sm:$0xf0] }
  0x19   :  { %v830_v20 = vor.u32 %v1098_v8, %v829_v7  ;;  %v834_v21 = vor.u32 %v1096_v9, %v831_v10  ;;  %v897_v22 = vld [vmem:[#allocation10 + $0x70] sm:$0xf]  ;;  %v1114_v23 = vld [vmem:[#allocation10 + $0x74] sm:$0xf0]  ;;  %v822_v30 = vor.u32 %v1097_v16, %v821_v11  ;;  %v826_v31 = vor.u32 %v1095_v17, %v823_v18  ;;  %v889_v36 = vld [vmem:[#allocation10 + $0x60] sm:$0xf] }
  0x1a   :  { %v961_v24 = vld [vmem:[#allocation10 + $0xf0] sm:$0xf]  ;;  %v132_v25 = vsel %vm130_vm0, %v122_v12, 0  ;;  %v135_v26 = vsel %vm130_vm0, %v123_v13, 0  ;;  %v138_v27 = vsel %vm130_vm0, %v124_v14, 0  ;;  %v141_v28 = vsel %vm130_vm0, %v125_v15, 0 }
  0x1b   :  { %v1130_v29 = vld [vmem:[#allocation10 + $0xf4] sm:$0xf0]  ;;  %150 = vmatpush.bf16.msra.mxu0 %v132_v25  ;;  %163 = vmatpush.bf16.msra.mxu1 %v135_v26  ;;  %v1025_v32 = vld [vmem:[#allocation10 + $0x170] sm:$0xf]  ;;  %v898_v34 = vor.u32 %v1114_v23, %v897_v22  ;;  %v1112_v39 = vld [vmem:[#allocation10 + $0x64] sm:$0xf0] }
  0x1c   :  { %176 = vmatpush.bf16.msra.mxu2 %v138_v27  ;;  %189 = vmatpush.bf16.msra.mxu3 %v141_v28  ;;  %v1146_v33 = vld [vmem:[#allocation10 + $0x174] sm:$0xf0]  ;;  %v962_v35 = vor.u32 %v1130_v29, %v961_v24  ;;  %v1089_v37 = vld [vmem:[#allocation10 + $0x1f0] sm:$0xf]  ;;  %v953_v40 = vld [vmem:[#allocation10 + $0xe0] sm:$0xf]  ;;  %v890_v48 = vor.u32 %v1112_v39, %v889_v36 }
  0x1d   :  { %v1162_v38 = vld [vmem:[#allocation10 + $0x1f4] sm:$0xf0]  ;;  %v1128_v41 = vld [vmem:[#allocation10 + $0xe4] sm:$0xf0]  ;;  %v1026_v42 = vor.u32 %v1146_v33, %v1025_v32  ;;  %v1017_v44 = vld [vmem:[#allocation10 + $0x160] sm:$0xf] }
  0x1e   :  { %815 = vmatmul.msk.bf16.vlgmr.msra.gmra.mxu0 %vm126_vm1, %v113_v19  ;;  %816 = vmatmul.msk.bf16.vlgmr.msra.gmra.mxu1 %vm126_vm1, %v113_v19  ;;  %v1090_v43 = vor.u32 %v1162_v38, %v1089_v37  ;;  %v1144_v45 = vld [vmem:[#allocation10 + $0x164] sm:$0xf0]  ;;  %v1081_v46 = vld [vmem:[#allocation10 + $0x1e0] sm:$0xf]  ;;  %v954_v49 = vor.u32 %v1128_v41, %v953_v40  ;;  %v881_v50 = vld [vmem:[#allocation10 + $0x50] sm:$0xf] }
  0x1f   :  { %817 = vmatmul.msk.bf16.vlgmr.msra.gmra.mxu2 %vm126_vm1, %v113_v19  ;;  %818 = vmatmul.msk.bf16.vlgmr.msra.gmra.mxu3 %vm126_vm1, %v113_v19  ;;  %v1160_v47 = vld [vmem:[#allocation10 + $0x1e4] sm:$0xf0]  ;;  %v1110_v51 = vld [vmem:[#allocation10 + $0x54] sm:$0xf0]  ;;  %v945_v52 = vld [vmem:[#allocation10 + $0xd0] sm:$0xf]  ;;  %v1018_v54 = vor.u32 %v1144_v45, %v1017_v44 }
  0x20   :  { %252 = vmatpush.bf16.msrb.mxu2 %v830_v20  ;;  %265 = vmatpush.bf16.msrb.mxu3 %v834_v21  ;;  %v1126_v53 = vld [vmem:[#allocation10 + $0xd4] sm:$0xf0]  ;;  %v1082_v55 = vor.u32 %v1160_v47, %v1081_v46  ;;  %v1009_v56 = vld [vmem:[#allocation10 + $0x150] sm:$0xf]  ;;  %v882_v60 = vor.u32 %v1110_v51, %v881_v50  ;;  %v873_v62 = vld [vmem:[#allocation10 + $0x40] sm:$0xf] }
  0x21   :  { %226 = vmatpush.bf16.msrb.mxu0 %v822_v30  ;;  %239 = vmatpush.bf16.msrb.mxu1 %v826_v31  ;;  %v1142_v57 = vld [vmem:[#allocation10 + $0x154] sm:$0xf0]  ;;  %v1073_v58 = vld [vmem:[#allocation10 + $0x1d0] sm:$0xf]  ;;  %v946_v61 = vor.u32 %v1126_v53, %v945_v52  ;;  %v1108_v63 = vld [vmem:[#allocation10 + $0x44] sm:$0xf0] }
  0x22   :  { %v1158_v59 = vld [vmem:[#allocation10 + $0x1d4] sm:$0xf0]  ;;  %v937_v0 = vld [vmem:[#allocation10 + $0xc0] sm:$0xf]  ;;  %v1124_v1 = vld [vmem:[#allocation10 + $0xc4] sm:$0xf0]  ;;  %v1010_v2 = vor.u32 %v1142_v57, %v1009_v56  ;;  %v874_v7 = vor.u32 %v1108_v63, %v873_v62 }
  0x23   :  { %v1074_v3 = vor.u32 %v1158_v59, %v1073_v58  ;;  %v106_v4 = vld [vmem:[#allocation3] sm:$0xff]  ;;  %v865_v5 = vld [vmem:[#allocation10 + $0x30] sm:$0xf]  ;;  %v938_v8 = vor.u32 %v1124_v1, %v937_v0  ;;  %v1140_v9 = vld [vmem:[#allocation10 + $0x144] sm:$0xf0]  ;;  %vm215_vm2 = vcmask 130048  }
  0x24   :  { %709 = vmatpush.bf16.msra.mxu2 %v1026_v42  ;;  %722 = vmatpush.bf16.msra.mxu3 %v1090_v43  ;;  %v1001_v6 = vld [vmem:[#allocation10 + $0x140] sm:$0xf]  ;;  %v1156_v11 = vld [vmem:[#allocation10 + $0x1c4] sm:$0xf0]  ;;  %v107_v12 = vpack.c.bf16 %v106_v4, %v106_v4  ;;  %v1106_v13 = vld [vmem:[#allocation10 + $0x34] sm:$0xf0] }
  0x25   :  { %683 = vmatpush.bf16.msra.mxu0 %v898_v34  ;;  %696 = vmatpush.bf16.msra.mxu1 %v962_v35  ;;  %v1065_v10 = vld [vmem:[#allocation10 + $0x1c0] sm:$0xf]  ;;  %v929_v14 = vld [vmem:[#allocation10 + $0xb0] sm:$0xf]  ;;  %v1122_v15 = vld [vmem:[#allocation10 + $0xb4] sm:$0xf0]  ;;  %v1002_v16 = vor.u32 %v1140_v9, %v1001_v6  ;;  %v866_v18 = vor.u32 %v1106_v13, %v865_v5 }
  0x26   :  { %v1066_v17 = vor.u32 %v1156_v11, %v1065_v10  ;;  %v930_v19 = vor.u32 %v1122_v15, %v929_v14  ;;  %v857_v20 = vld [vmem:[#allocation10 + $0x20] sm:$0xf]  ;;  %v1104_v21 = vld [vmem:[#allocation10 + $0x24] sm:$0xf0]  ;;  %v993_v25 = vld [vmem:[#allocation10 + $0x130] sm:$0xf] }
  0x27   :  { %v921_v22 = vld [vmem:[#allocation10 + $0xa0] sm:$0xf]  ;;  %v858_v23 = vor.u32 %v1104_v21, %v857_v20  ;;  %v1120_v24 = vld [vmem:[#allocation10 + $0xa4] sm:$0xf0]  ;;  %v1138_v26 = vld [vmem:[#allocation10 + $0x134] sm:$0xf0] }
  0x28   :  { %710 = vmatpush.bf16.msra.mxu2 %v1018_v54  ;;  %723 = vmatpush.bf16.msra.mxu3 %v1082_v55  ;;  %v922_v27 = vor.u32 %v1120_v24, %v921_v22  ;;  %v994_v28 = vor.u32 %v1138_v26, %v993_v25  ;;  %v1057_v29 = vld [vmem:[#allocation10 + $0x1b0] sm:$0xf]  ;;  %v1154_v30 = vld [vmem:[#allocation10 + $0x1b4] sm:$0xf0]  ;;  %v985_v38 = vld [vmem:[#allocation10 + $0x120] sm:$0xf] }
  0x29   :  { %684 = vmatpush.bf16.msra.mxu0 %v890_v48  ;;  %697 = vmatpush.bf16.msra.mxu1 %v954_v49  ;;  %v849_v31 = vld [vmem:[#allocation10 + $0x10] sm:$0xf]  ;;  %v1058_v32 = vor.u32 %v1154_v30, %v1057_v29  ;;  %v1102_v33 = vld [vmem:[#allocation10 + $0x14] sm:$0xf0]  ;;  %v1136_v39 = vld [vmem:[#allocation10 + $0x124] sm:$0xf0] }
  0x2a   :  { %v913_v34 = vld [vmem:[#allocation10 + $0x90] sm:$0xf]  ;;  %v1118_v35 = vld [vmem:[#allocation10 + $0x94] sm:$0xf0]  ;;  %v850_v36 = vor.u32 %v1102_v33, %v849_v31  ;;  %v1049_v40 = vld [vmem:[#allocation10 + $0x1a0] sm:$0xf]  ;;  %v986_v41 = vor.u32 %v1136_v39, %v985_v38 }
  0x2b   :  { %v914_v37 = vor.u32 %v1118_v35, %v913_v34  ;;  %v1152_v42 = vld [vmem:[#allocation10 + $0x1a4] sm:$0xf0]  ;;  %v841_v44 = vld [vmem:[#allocation10] sm:$0xf]  ;;  %v1113_v49 = vld [vmem:[#allocation10 + $0x74] sm:$0xf] }
  0x2c   :  { %711 = vmatpush.bf16.msra.mxu2 %v1010_v2  ;;  %724 = vmatpush.bf16.msra.mxu3 %v1074_v3  ;;  %v1050_v43 = vor.u32 %v1152_v42, %v1049_v40  ;;  %v1100_v45 = vld [vmem:[#allocation10 + $0x4] sm:$0xf0]  ;;  %v905_v46 = vld [vmem:[#allocation10 + $0x80] sm:$0xf]  ;;  %v899_v50 = vld [vmem:[#allocation10 + $0x78] sm:$0xf0] }
  0x2d   :  { %685 = vmatpush.bf16.msra.mxu0 %v882_v60  ;;  %698 = vmatpush.bf16.msra.mxu1 %v946_v61  ;;  %v842_v47 = vor.u32 %v1100_v45, %v841_v44  ;;  %v1116_v48 = vld [vmem:[#allocation10 + $0x84] sm:$0xf0]  ;;  %v902_v52 = vor.u32 %v1113_v49, %v899_v50  ;;  %v1129_v53 = vld [vmem:[#allocation10 + $0xf4] sm:$0xf]  ;;  %v963_v54 = vld [vmem:[#allocation10 + $0xf8] sm:$0xf0] }
  0x2e   :  { %835 = vmatmul.msk.bf16.vlgmr.msrb.gmra.mxu0 %vm215_vm2, %v107_v12  ;;  %836 = vmatmul.msk.bf16.vlgmr.msrb.gmra.mxu1 %vm215_vm2, %v107_v12  ;;  %v906_v51 = vor.u32 %v1116_v48, %v905_v46  ;;  %v977_v55 = vld [vmem:[#allocation10 + $0x110] sm:$0xf]  ;;  %v966_v56 = vor.u32 %v1129_v53, %v963_v54  ;;  %v1134_v57 = vld [vmem:[#allocation10 + $0x114] sm:$0xf0]  ;;  %v1111_v62 = vld [vmem:[#allocation10 + $0x64] sm:$0xf] }
  0x2f   :  { %837 = vmatmul.msk.bf16.vlgmr.msrb.gmra.mxu2 %vm215_vm2, %v107_v12  ;;  %838 = vmatmul.msk.bf16.vlgmr.msrb.gmra.mxu3 %vm215_vm2, %v107_v12  ;;  %v1041_v58 = vld [vmem:[#allocation10 + $0x190] sm:$0xf]  ;;  %v1150_v59 = vld [vmem:[#allocation10 + $0x194] sm:$0xf0]  ;;  %v978_v60 = vor.u32 %v1134_v57, %v977_v55  ;;  %v891_v63 = vld [vmem:[#allocation10 + $0x68] sm:$0xf0] }
  0x30   :  { %712 = vmatpush.bf16.msra.mxu2 %v1002_v16  ;;  %725 = vmatpush.bf16.msra.mxu3 %v1066_v17  ;;  %v1042_v61 = vor.u32 %v1150_v59, %v1041_v58  ;;  %v1127_v0 = vld [vmem:[#allocation10 + $0xe4] sm:$0xf]  ;;  %v894_v1 = vor.u32 %v1111_v62, %v891_v63  ;;  %v955_v2 = vld [vmem:[#allocation10 + $0xe8] sm:$0xf0]  ;;  %v969_v3 = vld [vmem:[#allocation10 + $0x100] sm:$0xf] }
  0x31   :  { %686 = vmatpush.bf16.msra.mxu0 %v874_v7  ;;  %699 = vmatpush.bf16.msra.mxu1 %v938_v8  ;;  %v1132_v4 = vld [vmem:[#allocation10 + $0x104] sm:$0xf0]  ;;  %v958_v5 = vor.u32 %v1127_v0, %v955_v2  ;;  %v1033_v7 = vld [vmem:[#allocation10 + $0x180] sm:$0xf]  ;;  %v1145_v9 = vld [vmem:[#allocation10 + $0x174] sm:$0xf] }
  0x32   :  { %v970_v6 = vor.u32 %v1132_v4, %v969_v3  ;;  %v1148_v8 = vld [vmem:[#allocation10 + $0x184] sm:$0xf0]  ;;  %v1027_v11 = vld [vmem:[#allocation10 + $0x178] sm:$0xf0]  ;;  %v1161_v12 = vld [vmem:[#allocation10 + $0x1f4] sm:$0xf] }
  0x33   :  { %v1034_v10 = vor.u32 %v1148_v8, %v1033_v7  ;;  %v1091_v13 = vld [vmem:[#allocation10 + $0x1f8] sm:$0xf0]  ;;  %v1030_v14 = vor.u32 %v1145_v9, %v1027_v11  ;;  %v1109_v16 = vld [vmem:[#allocation10 + $0x54] sm:$0xf]  ;;  %v1143_v22 = vld [vmem:[#allocation10 + $0x164] sm:$0xf] }
  0x34   :  { %713 = vmatpush.bf16.msra.mxu2 %v994_v28  ;;  %726 = vmatpush.bf16.msra.mxu3 %v1058_v32  ;;  %v1094_v15 = vor.u32 %v1161_v12, %v1091_v13  ;;  %v883_v17 = vld [vmem:[#allocation10 + $0x58] sm:$0xf0]  ;;  %v1159_v25 = vld [vmem:[#allocation10 + $0x1e4] sm:$0xf]  ;;  %v1083_v26 = vld [vmem:[#allocation10 + $0x1e8] sm:$0xf0] }
  0x35   :  { %687 = vmatpush.bf16.msra.mxu0 %v866_v18  ;;  %700 = vmatpush.bf16.msra.mxu1 %v930_v19  ;;  %v1125_v18 = vld [vmem:[#allocation10 + $0xd4] sm:$0xf]  ;;  %v886_v19 = vor.u32 %v1109_v16, %v883_v17  ;;  %v947_v20 = vld [vmem:[#allocation10 + $0xd8] sm:$0xf0]  ;;  %v1107_v28 = vld [vmem:[#allocation10 + $0x44] sm:$0xf] }
  0x36   :  { %v950_v21 = vor.u32 %v1125_v18, %v947_v20  ;;  %v875_v29 = vld [vmem:[#allocation10 + $0x48] sm:$0xf0]  ;;  %v1123_v30 = vld [vmem:[#allocation10 + $0xc4] sm:$0xf]  ;;  %v1141_v34 = vld [vmem:[#allocation10 + $0x154] sm:$0xf] }
  0x37   :  { %v878_v31 = vor.u32 %v1107_v28, %v875_v29  ;;  %v939_v32 = vld [vmem:[#allocation10 + $0xc8] sm:$0xf0]  ;;  %v1011_v35 = vld [vmem:[#allocation10 + $0x158] sm:$0xf0]  ;;  %v1105_v40 = vld [vmem:[#allocation10 + $0x34] sm:$0xf] }
  0x38   :  { %714 = vmatpush.bf16.msra.mxu2 %v986_v41  ;;  %727 = vmatpush.bf16.msra.mxu3 %v1050_v43  ;;  %v942_v33 = vor.u32 %v1123_v30, %v939_v32  ;;  %v1075_v38 = vld [vmem:[#allocation10 + $0x1d8] sm:$0xf0]  ;;  %v1121_v43 = vld [vmem:[#allocation10 + $0xb4] sm:$0xf]  ;;  %v1139_v46 = vld [vmem:[#allocation10 + $0x144] sm:$0xf] }
  0x39   :  { %688 = vmatpush.bf16.msra.mxu0 %v858_v23  ;;  %701 = vmatpush.bf16.msra.mxu1 %v922_v27  ;;  %v1019_v23 = vld [vmem:[#allocation10 + $0x168] sm:$0xf0]  ;;  %v1086_v27 = vor.u32 %v1159_v25, %v1083_v26  ;;  %v867_v41 = vld [vmem:[#allocation10 + $0x38] sm:$0xf0]  ;;  %v1155_v48 = vld [vmem:[#allocation10 + $0x1c4] sm:$0xf] }
  0x3a   :  { %v1022_v24 = vor.u32 %v1143_v22, %v1019_v23  ;;  %v870_v42 = vor.u32 %v1105_v40, %v867_v41  ;;  %v931_v44 = vld [vmem:[#allocation10 + $0xb8] sm:$0xf0]  ;;  %v1067_v50 = vld [vmem:[#allocation10 + $0x1c8] sm:$0xf0]  ;;  %v1119_v54 = vld [vmem:[#allocation10 + $0xa4] sm:$0xf] }
  0x3b   :  { %v934_v45 = vor.u32 %v1121_v43, %v931_v44  ;;  %v859_v53 = vld [vmem:[#allocation10 + $0x28] sm:$0xf0]  ;;  %v1137_v58 = vld [vmem:[#allocation10 + $0x134] sm:$0xf]  ;;  %v995_v59 = vld [vmem:[#allocation10 + $0x138] sm:$0xf0] }
  0x3c   :  { %715 = vmatpush.bf16.msra.mxu2 %v978_v60  ;;  %728 = vmatpush.bf16.msra.mxu3 %v1042_v61  ;;  %v1153_v60 = vld [vmem:[#allocation10 + $0x1b4] sm:$0xf]  ;;  %v998_v61 = vor.u32 %v1137_v58, %v995_v59  ;;  %v1059_v62 = vld [vmem:[#allocation10 + $0x1b8] sm:$0xf0]  ;;  %v1135_v7 = vld [vmem:[#allocation10 + $0x124] sm:$0xf] }
  0x3d   :  { %689 = vmatpush.bf16.msra.mxu0 %v850_v36  ;;  %702 = vmatpush.bf16.msra.mxu1 %v914_v37  ;;  %v1157_v36 = vld [vmem:[#allocation10 + $0x1d4] sm:$0xf]  ;;  %v1014_v37 = vor.u32 %v1141_v34, %v1011_v35  ;;  %v851_v3 = vld [vmem:[#allocation10 + $0x18] sm:$0xf0]  ;;  %v987_v8 = vld [vmem:[#allocation10 + $0x128] sm:$0xf0] }
  0x3e   :  { %v1078_v39 = vor.u32 %v1157_v36, %v1075_v38  ;;  %v1101_v2 = vld [vmem:[#allocation10 + $0x14] sm:$0xf]  ;;  %v1151_v11 = vld [vmem:[#allocation10 + $0x1a4] sm:$0xf]  ;;  %v1051_v12 = vld [vmem:[#allocation10 + $0x1a8] sm:$0xf0] }
  0x3f   :  { %v1117_v4 = vld [vmem:[#allocation10 + $0x94] sm:$0xf]  ;;  %v1099_v13 = vld [vmem:[#allocation10 + $0x4] sm:$0xf]  ;;  %v907_v17 = vld [vmem:[#allocation10 + $0x88] sm:$0xf0] }
  0x40   :  { %716 = vmatpush.bf16.msra.mxu2 %v970_v6  ;;  %729 = vmatpush.bf16.msra.mxu3 %v1034_v10  ;;  %v915_v6 = vld [vmem:[#allocation10 + $0x98] sm:$0xf0]  ;;  %v990_v10 = vor.u32 %v1135_v7, %v987_v8  ;;  %v1115_v16 = vld [vmem:[#allocation10 + $0x84] sm:$0xf]  ;;  %v1133_v20 = vld [vmem:[#allocation10 + $0x114] sm:$0xf] }
  0x41   :  { %690 = vmatpush.bf16.msra.mxu0 %v842_v47  ;;  %703 = vmatpush.bf16.msra.mxu1 %v906_v51  ;;  %v1003_v47 = vld [vmem:[#allocation10 + $0x148] sm:$0xf0]  ;;  %v1070_v51 = vor.u32 %v1155_v48, %v1067_v50  ;;  %v918_v9 = vor.u32 %v1117_v4, %v915_v6  ;;  %v1149_v22 = vld [vmem:[#allocation10 + $0x194] sm:$0xf]  ;;  %v1043_v23 = vld [vmem:[#allocation10 + $0x198] sm:$0xf0] }
  0x42   :  { %v1006_v49 = vor.u32 %v1139_v46, %v1003_v47  ;;  %v1046_v25 = vor.u32 %v1149_v22, %v1043_v23  ;;  %v1131_v30 = vld [vmem:[#allocation10 + $0x104] sm:$0xf]  ;;  %v1035_v34 = vld [vmem:[#allocation10 + $0x188] sm:$0xf0]  ;;  %v271_v36 = vld [vmem:[%s1399_s4] sm:$0xf] }
  0x43   :  { %v1147_v32 = vld [vmem:[#allocation10 + $0x184] sm:$0xf]  ;;  %v274_v40 = vperm.slane %v271_v36, 1  ;;  %v276_v50 = vperm.slane %v271_v36, 3  ;;  %v357_v7 = vld [vmem:[%s1401_s6] sm:$0x3] }
  0x44   :  { %761 = vmatpush.bf16.msrb.mxu2 %v1030_v14  ;;  %774 = vmatpush.bf16.msrb.mxu3 %v1094_v15  ;;  %v1054_v14 = vor.u32 %v1151_v11, %v1051_v12  ;;  %v843_v15 = vld [vmem:[#allocation10 + $0x8] sm:$0xf0]  ;;  %v1038_v35 = vor.u32 %v1147_v32, %v1035_v34  ;;  %vm806_vm3 = vcmask 7168  }
  0x45   :  { %735 = vmatpush.bf16.msrb.mxu0 %v902_v52  ;;  %748 = vmatpush.bf16.msrb.mxu1 %v966_v56  ;;  %v1103_v52 = vld [vmem:[#allocation10 + $0x24] sm:$0xf]  ;;  %v923_v56 = vld [vmem:[#allocation10 + $0xa8] sm:$0xf0]  ;;  %v846_v18 = vor.u32 %v1099_v13, %v843_v15 }
  0x46   :  { %v862_v55 = vor.u32 %v1103_v52, %v859_v53  ;;  %v926_v57 = vor.u32 %v1119_v54, %v923_v56 }
  0x48   :  { %762 = vmatpush.bf16.msrb.mxu2 %v1022_v24  ;;  %775 = vmatpush.bf16.msrb.mxu3 %v1086_v27 }
  0x49   :  { %736 = vmatpush.bf16.msrb.mxu0 %v894_v1  ;;  %749 = vmatpush.bf16.msrb.mxu1 %v958_v5  ;;  %v1062_v1 = vor.u32 %v1153_v60, %v1059_v62  ;;  %v854_v5 = vor.u32 %v1101_v2, %v851_v3 }
  0x4c   :  { %763 = vmatpush.bf16.msrb.mxu2 %v1014_v37  ;;  %776 = vmatpush.bf16.msrb.mxu3 %v1078_v39  ;;  %v273_v39 = vperm.slane %v271_v36, 0 }
  0x4d   :  { %737 = vmatpush.bf16.msrb.mxu0 %v886_v19  ;;  %750 = vmatpush.bf16.msrb.mxu1 %v950_v21  ;;  %v910_v19 = vor.u32 %v1115_v16, %v907_v17  ;;  %v979_v21 = vld [vmem:[#allocation10 + $0x118] sm:$0xf0]  ;;  %v789_v17 = vld [vmem:[%s1402_s7] sm:$0x3] }
  0x4e   :  { %v982_v24 = vor.u32 %v1133_v20, %v979_v21  ;;  %v790_v23 = vunpack.c.l.bf16 %v789_v17 }
  0x50   :  { %764 = vmatpush.bf16.msrb.mxu2 %v1006_v49  ;;  %777 = vmatpush.bf16.msrb.mxu3 %v1070_v51  ;;  %v275_v49 = vperm.slane %v271_v36, 2 }
  0x51   :  { %738 = vmatpush.bf16.msrb.mxu0 %v878_v31  ;;  %751 = vmatpush.bf16.msrb.mxu1 %v942_v33  ;;  %v971_v31 = vld [vmem:[#allocation10 + $0x108] sm:$0xf0] }
  0x52   :  { %v974_v33 = vor.u32 %v1131_v30, %v971_v31 }
  0x54   :  { %765 = vmatpush.bf16.msrb.mxu2 %v998_v61  ;;  %778 = vmatpush.bf16.msrb.mxu3 %v1062_v1 }
  0x55   :  { %739 = vmatpush.bf16.msrb.mxu0 %v870_v42  ;;  %752 = vmatpush.bf16.msrb.mxu1 %v934_v45 }
  0x58   :  { %766 = vmatpush.bf16.msrb.mxu2 %v990_v10  ;;  %779 = vmatpush.bf16.msrb.mxu3 %v1054_v14  ;;  %v359_v10 = vperm.slane %v357_v7, 0  ;;  %v360_v14 = vperm.slane %v357_v7, 1 }
  0x59   :  { %740 = vmatpush.bf16.msrb.mxu0 %v862_v55  ;;  %753 = vmatpush.bf16.msrb.mxu1 %v926_v57 }
  0x5c   :  { %767 = vmatpush.bf16.msrb.mxu2 %v982_v24  ;;  %780 = vmatpush.bf16.msrb.mxu3 %v1046_v25 }
  0x5d   :  { %741 = vmatpush.bf16.msrb.mxu0 %v854_v5  ;;  %754 = vmatpush.bf16.msrb.mxu1 %v918_v9 }
  0x60   :  { %768 = vmatpush.bf16.msrb.mxu2 %v974_v33  ;;  %781 = vmatpush.bf16.msrb.mxu3 %v1038_v35 }
  0x61   :  { %742 = vmatpush.bf16.msrb.mxu0 %v846_v18  ;;  %755 = vmatpush.bf16.msrb.mxu1 %v910_v19 }
  0x9b   :  { %v152_v63 = vpop.f32.mrf.mxu0  ;;  %v165_v0 = vpop.f32.mrf.mxu1 }
  0xa2   :  { %v178_v26 = vpop.f32.mrf.mxu2  ;;  %v191_v27 = vpop.f32.mrf.mxu3 }
  0xa3   :  { %v154_v28 = vpop.f32.mrf.mxu0  ;;  %v167_v29 = vpop.f32.mrf.mxu1 }
  0xaa   :  { %v180_v37 = vpop.f32.mrf.mxu2  ;;  %v193_v38 = vpop.f32.mrf.mxu3 }
  0xab   :  { %v228_v41 = vpop.f32.mrf.mxu0  ;;  %v241_v42 = vpop.f32.mrf.mxu1 }
  0xac   :  { %v229_v43 = vadd.f32 %v228_v41, %v152_v63  ;;  %v242_v44 = vadd.f32 %v241_v42, %v165_v0  ;;  %v804_v41 = vstv %s1403_s8 }
  0xae   :  { %v281_v45 = vadd.f32 %v273_v39, %v229_v43  ;;  %v282_v46 = vadd.f32 %v274_v40, %v242_v44 }
  0xb0   :  { %v285_v47 = vmax.f32 %v281_v45, 0.0  ;;  %v286_v48 = vmax.f32 %v282_v46, 0.0 }
  0xb2   :  { %v289_v51 = vpack.c.bf16 %v285_v47, %v285_v47  ;;  %v290_v52 = vpack.c.bf16 %v286_v48, %v286_v48  ;;  %v254_v53 = vpop.f32.mrf.mxu2  ;;  %v267_v54 = vpop.f32.mrf.mxu3 }
  0xb3   :  { %v255_v55 = vadd.f32 %v254_v53, %v178_v26  ;;  %v268_v56 = vadd.f32 %v267_v54, %v191_v27  ;;  %v230_v57 = vpop.f32.mrf.mxu0  ;;  %v243_v58 = vpop.f32.mrf.mxu1  ;;  %v792_v26 = vperm.slane %v790_v23, 0  ;;  %v793_v27 = vperm.slane %v790_v23, 2 }
  0xb4   :  { %691 = vmatmul.bf16.vlgmr.msra.gmra.mxu0 %v289_v51  ;;  %704 = vmatmul.bf16.vlgmr.msra.gmra.mxu1 %v290_v52 }
  0xb5   :  { %v283_v59 = vadd.f32 %v275_v49, %v255_v55  ;;  %v284_v60 = vadd.f32 %v276_v50, %v268_v56  ;;  %v796_v33 = vperm.slane %v792_v26, 0  ;;  %v797_v34 = vperm.slane %v793_v27, 0 }
  0xb7   :  { %v287_v61 = vmax.f32 %v283_v59, 0.0  ;;  %v288_v62 = vmax.f32 %v284_v60, 0.0 }
  0xb9   :  { %v291_v63 = vpack.c.bf16 %v287_v61, %v287_v61  ;;  %v292_v0 = vpack.c.bf16 %v288_v62, %v288_v62 }
  0xba   :  { %v256_v1 = vpop.f32.mrf.mxu2  ;;  %v269_v2 = vpop.f32.mrf.mxu3 }
  0xbb   :  { %717 = vmatmul.bf16.vlgmr.msra.gmra.mxu2 %v291_v63  ;;  %730 = vmatmul.bf16.vlgmr.msra.gmra.mxu3 %v292_v0 }
  0xc4   :  { %743 = vmatmul.bf16.vlgmr.msrb.gmra.mxu0 %v289_v51  ;;  %756 = vmatmul.bf16.vlgmr.msrb.gmra.mxu1 %v290_v52 }
  0xcb   :  { %769 = vmatmul.bf16.vlgmr.msrb.gmra.mxu2 %v291_v63  ;;  %782 = vmatmul.bf16.vlgmr.msrb.gmra.mxu3 %v292_v0 }
 0x131   :  { %v692_v3 = vpop.f32.mrf.mxu0  ;;  %v705_v4 = vpop.f32.mrf.mxu1 }
 0x132   :  { %v693_v13 = vadd.f32 %v692_v3, %v359_v10 }
 0x134   :  { %v706_v18 = vadd.f32 %v705_v4, %v693_v13 }
 0x139   :  { %v694_v5 = vpop.f32.mrf.mxu0  ;;  %v707_v6 = vpop.f32.mrf.mxu1 }
 0x13e   :  { %v718_v8 = vpop.f32.mrf.mxu2  ;;  %v731_v9 = vpop.f32.mrf.mxu3 }
 0x13f   :  { %v719_v19 = vadd.f32 %v718_v8, %v706_v18 }
 0x141   :  { %v744_v11 = vpop.f32.mrf.mxu0  ;;  %v757_v12 = vpop.f32.mrf.mxu1  ;;  %v732_v24 = vadd.f32 %v731_v9, %v719_v19 }
 0x142   :  { %v745_v20 = vadd.f32 %v744_v11, %v360_v14 }
 0x143   :  { %v787_v31 = vmax.f32 %v732_v24, 0.0 }
 0x144   :  { %v758_v25 = vadd.f32 %v757_v12, %v745_v20 }
 0x145   :  { %v798_v36 = vmul.f32 %v796_v33, %v787_v31 }
 0x146   :  { %v720_v15 = vpop.f32.mrf.mxu2  ;;  %v733_v16 = vpop.f32.mrf.mxu3 }
 0x149   :  { %v746_v21 = vpop.f32.mrf.mxu0  ;;  %v759_v22 = vpop.f32.mrf.mxu1 }
 0x14e   :  { %v770_v28 = vpop.f32.mrf.mxu2  ;;  %v783_v29 = vpop.f32.mrf.mxu3 }
 0x14f   :  { %v771_v30 = vadd.f32 %v770_v28, %v758_v25 }
 0x151   :  { %v784_v32 = vadd.f32 %v783_v29, %v771_v30 }
 0x153   :  { %v788_v35 = vmax.f32 %v784_v32, 0.0 }
 0x155   :  { %v799_v37 = vmul.f32 %v797_v34, %v788_v35 }
 0x156   :  { %v772_v38 = vpop.f32.mrf.mxu2  ;;  %v785_v39 = vpop.f32.mrf.mxu3 }
 0x157   :  { %v800_v40 = vadd.f32 %v799_v37, %v798_v36 }
 0x159   :  { %801 = vadd.xlane.f32.xlu0 %v800_v40 }
 0x1cc   :  { %v802_v42 = vpop.xlane.xlu0 %801 }
 0x1cd   :  { %v805_v43 = vadd.f32 %v804_v41, %v802_v42 }
 0x1cf   :  { %807 = vst.msk [vmem:[%s1404_s9] sm:$0xff] %vm806_vm3, %v805_v43 }
 0x1d0   :  { %812 = vsyncpa [#allocation4], 1 }
 0x1d1   :  { %813 = vsyncpa [#allocation6], 1 }
 0x1d2   :  { %814 = vsyncpa [#allocation9], 1 }

</bundles_post_ra>
